<compile_context>
chip_gen: v7x
topology: tpu7x:2x2x1
jax: 0.10.0
libtpu: 0.0.40
codegen_flags: <defaults>
</compile_context>

<pallas_src>
import functools

import jax
import jax.numpy as jnp
from jax.experimental import pallas as pl
from jax.experimental.pallas import tpu as pltpu


def _vmem_capacity_bytes():
    """Per-core VMEM capacity; conservative fallback when not on a TPU host."""
    try:
        return int(pltpu.get_tpu_info().vmem_capacity_bytes)
    except Exception:
        return 64 << 20  # v7x per-TensorCore size — safe lower bound


def _sfdp_kernel(wq_ref, wk_ref, wv_ref, *rest, scale, p):
    if p > 0.0:
        rand_ref, out_ref = rest
    else:
        (out_ref,) = rest

    wq = wq_ref[...]
    wk = wk_ref[...]

    # qk = Wq @ Wk^T : contract the last dim of both operands (trans-B), so
    # the MXU consumes Wk in place — no XLU transpose / VMEM relayout of Wk.
    qk = jax.lax.dot_general(
        wq, wk,
        dimension_numbers=(((1,), (1,)), ((), ())),
        preferred_element_type=jnp.float32,
    )

    # Numerically stable softmax(scale * qk) over the last dim.  For scale > 0
    # the scale is folded into the exp argument (max commutes with positive
    # scaling), saving a full (tm, E) VPU multiply pass.
    if scale == 1.0:
        m = jnp.max(qk, axis=-1, keepdims=True)
        e = jnp.exp(qk - m)
    elif scale > 0.0:
        m = jnp.max(qk, axis=-1, keepdims=True)
        e = jnp.exp((qk - m) * jnp.float32(scale))
    else:
        qk = qk * jnp.float32(scale)
        m = jnp.max(qk, axis=-1, keepdims=True)
        e = jnp.exp(qk - m)

    # Row normaliser on the EUP; the inverted-dropout 1/(1-p) scale is folded
    # into the (tm, 1) reciprocal instead of a second (tm, E) multiply pass.
    inv = pl.reciprocal(jnp.sum(e, axis=-1, keepdims=True), approx=True)
    if p > 0.0:
        inv = inv * jnp.float32(1.0 / (1.0 - p))
        keep = rand_ref[...] >= jnp.float32(p)          # P(keep) = 1 - p
        drop = jnp.where(keep, e * inv, jnp.float32(0.0))
    else:
        drop = e * inv

    # output = drop @ Wv, bf16 MXU inputs with f32 accumulation.
    out_ref[...] = jax.lax.dot_general(
        drop.astype(wv_ref.dtype), wv_ref[...],
        dimension_numbers=(((1,), (0,)), ((), ())),
        preferred_element_type=jnp.float32,
    ).astype(out_ref.dtype)


def sfdp_pattern(wq, wk, wv, *, scale_factor=1.0, dropout_p=0.0, seed=0,
                 use_bf16=True):
    """Fused qk -> scale -> softmax -> dropout -> @V."""
    E = wq.shape[0]
    assert wq.shape == wk.shape == wv.shape == (E, E)
    p = float(dropout_p)

    # p >= 1 (the module's actual constant): F.dropout(..., p=1, training=True)
    # zeroes everything, so the result is exactly zeros.  No Pallas launch, no
    # HBM weight reads, and no VMEM ceiling on E.
    if p >= 1.0:
        return jnp.zeros((E, E), jnp.float32)

    # Cast weights to bf16 upstream of the kernel: halves HBM->VMEM DMA bytes
    # for all three weights and halves resident Wk/Wv VMEM; MXU still
    # accumulates in f32.
    if use_bf16:
        wq = wq.astype(jnp.bfloat16)
        wk = wk.astype(jnp.bfloat16)
        wv = wv.astype(jnp.bfloat16)
    wbytes = jnp.dtype(wq.dtype).itemsize

    cap = _vmem_capacity_bytes()
    # Row-tile Wq / output; Wk / Wv stay fully resident (softmax spans the
    # full K dim and the second matmul needs all of Wv).  Larger tiles on
    # 128 MiB parts (v5e/v6e), smaller on v7x (64 MiB/TC).  For the small E
    # used by this module this degenerates to one full-array block.
    target_tm = 512 if cap >= (96 << 20) else 256
    if E <= target_tm:
        tm = E
    else:
        tm = None
        for cand in range(target_tm, 7, -8):  # multiples of 8 that divide E
            if E % cand == 0:
                tm = cand
                break
        if tm is None:
            tm = E  # awkward E (not a multiple of 8): single-block fallback
            # TODO(synk): masked tail tiling (pl.cdiv grid) for E % 8 != 0.
    grid = (E // tm,)

    # VMEM footprint: BlockSpec inputs/outputs are double-buffered by default,
    # and Wk/Wv land in VMEM at their passed-in dtype.
    est = (2 * tm * E * wbytes        # Wq tile, x2 buffers
           + 2 * tm * E * 4           # out tile, x2 buffers
           + 2 * 2 * E * E * wbytes   # Wk + Wv resident, x2 buffers each
           + 4 * tm * E * 4)          # qk / e / drop f32 intermediates
    if p > 0.0:
        est += 2 * tm * E * 4         # dropout uniforms tile, x2 buffers
    vmem_limit = None
    if est > (16 << 20):              # v5e scoped default
        vmem_limit = min(est + (4 << 20), cap - (8 << 20))

    args = [wq, wk, wv]
    in_specs = [
        pl.BlockSpec((tm, E), lambda i: (i, 0)),   # Wq row tile
        pl.BlockSpec((E, E), lambda i: (0, 0)),    # Wk (resident, constant idx)
        pl.BlockSpec((E, E), lambda i: (0, 0)),    # Wv (resident, constant idx)
    ]
    # TODO(synk): single-buffering Wk/Wv (pipeline_mode=pl.Buffered(1)) and a
    # flash-style K-tiled online softmax would lift the resident-Wk/Wv VMEM
    # ceiling at very large E (matters most on v7x's 64 MiB VMEM).
    if p > 0.0:
        # Dropout keep-test from host-side uniforms (portable: the TPU
        # hardware PRNG has no interpret-mode lowering); P(keep) = 1 - p.
        # Reproducible from `seed`, but not bitwise-compatible with PyTorch.
        rand = jax.random.uniform(jax.random.PRNGKey(seed), (E, E), jnp.float32)
        args.append(rand)
        in_specs.append(pl.BlockSpec((tm, E), lambda i: (i, 0)))

    kernel = functools.partial(_sfdp_kernel, scale=float(scale_factor), p=p)

    return pl.pallas_call(
        kernel,
        out_shape=jax.ShapeDtypeStruct((E, E), jnp.float32),
        grid=grid,
        in_specs=in_specs,
        out_specs=pl.BlockSpec((tm, E), lambda i: (i, 0)),
        compiler_params=pltpu.CompilerParams(
            dimension_semantics=("parallel",),   # shard row tiles across TCs
            vmem_limit_bytes=vmem_limit,
        ),
    )(*args)


if __name__ == "__main__":
    # embed_dim (= query.shape[2] in the PyTorch module)
    E = 32
    # TODO(synk): at E=32 the output last dim is lane-masked (<128) and the
    # problem is launch-overhead bound; batching several independent problems
    # along the lane axis (or plain XLA) would be faster, but is out of scope
    # for this single-problem module.

    key0 = jax.random.PRNGKey(0)
    kq, kk, kv = jax.random.split(key0, 3)
    bound = 1.0 / (E ** 0.5)
    wq = jax.random.uniform(kq, (E, E), jnp.float32, -bound, bound)
    wk = jax.random.uniform(kk, (E, E), jnp.float32, -bound, bound)
    wv = jax.random.uniform(kv, (E, E), jnp.float32, -bound, bound)

    # 1) Module constants: scale_factor=1.0, dropout_p=1  =>  exact zeros
    #    (pure jnp.zeros; no kernel launch for the degenerate case).
    out_p1 = sfdp_pattern(wq, wk, wv, scale_factor=1.0, dropout_p=1.0)
    jax.block_until_ready(out_p1)
    assert out_p1.shape == (E, E) and out_p1.dtype == jnp.float32
    assert bool(jnp.all(out_p1 == 0.0))

    # 2) p = 0 Pallas path against a pure-JAX f32 reference (bf16-MXU tol).
    out_p0 = sfdp_pattern(wq, wk, wv, scale_factor=1.0, dropout_p=0.0)
    jax.block_until_ready(out_p0)
    ref0 = jnp.dot(jax.nn.softmax(jnp.dot(wq, wk.T), axis=-1), wv)
    assert bool(jnp.allclose(out_p0, ref0, rtol=5e-2, atol=5e-3))

    # 3) 0 < p < 1 Pallas path; the dropout uniforms are reproducible from the
    #    seed, so compare against an exact pure-JAX reference.
    p, scale, seed = 0.1, 1.0 / (E ** 0.5), 7
    out_pd = sfdp_pattern(wq, wk, wv, scale_factor=scale, dropout_p=p, seed=seed)
    jax.block_until_ready(out_pd)
    soft = jax.nn.softmax(jnp.dot(wq, wk.T) * scale, axis=-1)
    keep = jax.random.uniform(jax.random.PRNGKey(seed), (E, E), jnp.float32) >= p
    refd = jnp.dot(jnp.where(keep, soft / (1.0 - p), 0.0), wv)
    assert out_pd.shape == (E, E)
    assert bool(jnp.allclose(out_pd, refd, rtol=5e-2, atol=5e-3))

    print("KERNEL_OK")
</pallas_src>

<mosaic_0001>
module attributes {stable_mosaic.version = 11 : i64} {
  func.func @_sfdp_kernel(%arg0: i32, %arg1: memref<32x32xbf16, #tpu.memory_space<vmem>>, %arg2: memref<32x32xbf16, #tpu.memory_space<vmem>>, %arg3: memref<32x32xbf16, #tpu.memory_space<vmem>>, %arg4: memref<32x32xf32, #tpu.memory_space<vmem>>) attributes {dimension_semantics = [#tpu.dimension_semantics<parallel>], iteration_bounds = array<i64: 1>, scalar_prefetch = 0 : i64, scratch_operands = 0 : i64, tpu.core_type = #tpu.core_type<tc>, window_params = [{transform_indices = @transform_0, window_bounds = array<i64: 32, 32>}, {pipeline_mode = #tpu.pipeline_mode<synchronous>, transform_indices = @transform_1, window_bounds = array<i64: 32, 32>}, {pipeline_mode = #tpu.pipeline_mode<synchronous>, transform_indices = @transform_2, window_bounds = array<i64: 32, 32>}, {transform_indices = @transform_3, window_bounds = array<i64: 32, 32>}]} {
    %c0 = arith.constant 0 : index
    %c0_0 = arith.constant 0 : index
    %0 = vector.load %arg1[%c0, %c0_0] : memref<32x32xbf16, #tpu.memory_space<vmem>>, vector<32x32xbf16>
    %c0_1 = arith.constant 0 : index
    %c0_2 = arith.constant 0 : index
    %1 = vector.load %arg2[%c0_1, %c0_2] : memref<32x32xbf16, #tpu.memory_space<vmem>>, vector<32x32xbf16>
    %cst = arith.constant dense<0.000000e+00> : vector<32x32xf32>
    %2 = tpu.matmul %0, %1, %cst {dimension_numbers = #tpu.dot_dimension_numbers<[1], [1], [0], [0], [0, 0, 1, 0], [], []>} : vector<32x32xbf16>, vector<32x32xbf16>, vector<32x32xf32> -> vector<32x32xf32>
    %cst_3 = arith.constant dense<0xFF800000> : vector<32xf32>
    %3 = vector.multi_reduction <maximumf>, %2, %cst_3 [1] : vector<32x32xf32> to vector<32xf32>
    %4 = vector.shape_cast %3 : vector<32xf32> to vector<32x1xf32>
    %5 = vector.broadcast %4 : vector<32x1xf32> to vector<32x32xf32>
    %6 = arith.subf %2, %5 : vector<32x32xf32>
    %7 = math.exp %6 : vector<32x32xf32>
    %cst_4 = arith.constant dense<0.000000e+00> : vector<32xf32>
    %8 = vector.multi_reduction <add>, %7, %cst_4 [1] : vector<32x32xf32> to vector<32xf32>
    %9 = vector.shape_cast %8 : vector<32xf32> to vector<32x1xf32>
    %10 = tpu.reciprocal %9 {approx = true} : vector<32x1xf32> -> vector<32x1xf32>
    %11 = vector.broadcast %10 : vector<32x1xf32> to vector<32x32xf32>
    %12 = arith.mulf %7, %11 : vector<32x32xf32>
    %13 = arith.truncf %12 : vector<32x32xf32> to vector<32x32xbf16>
    %c0_5 = arith.constant 0 : index
    %c0_6 = arith.constant 0 : index
    %14 = vector.load %arg3[%c0_5, %c0_6] : memref<32x32xbf16, #tpu.memory_space<vmem>>, vector<32x32xbf16>
    %cst_7 = arith.constant dense<0.000000e+00> : vector<32x32xf32>
    %15 = tpu.matmul %13, %14, %cst_7 {dimension_numbers = #tpu.dot_dimension_numbers<[1], [0], [0], [1], [0, 0, 1, 1], [], []>} : vector<32x32xbf16>, vector<32x32xbf16>, vector<32x32xf32> -> vector<32x32xf32>
    %c0_8 = arith.constant 0 : index
    %c0_9 = arith.constant 0 : index
    %16 = vector.load %arg4[%c0_8, %c0_9] : memref<32x32xf32, #tpu.memory_space<vmem>>, vector<32x32xf32>
    tpu.vector_store %arg4[%c0_8, %c0_9], %15 {strides = array<i32>} : memref<32x32xf32, #tpu.memory_space<vmem>>, vector<32x32xf32>,
    return
  }
  func.func @transform_0(%arg0: i32) -> (i32, i32) {
    %c0_i32 = arith.constant 0 : i32
    %c0_i32_0 = arith.constant 0 : i32
    return %arg0, %c0_i32 : i32, i32
  }
  func.func @transform_1(%arg0: i32) -> (i32, i32) {
    %c0_i32 = arith.constant 0 : i32
    %c0_i32_0 = arith.constant 0 : i32
    %c0_i32_1 = arith.constant 0 : i32
    return %c0_i32, %c0_i32_0 : i32, i32
  }
  func.func @transform_2(%arg0: i32) -> (i32, i32) {
    %c0_i32 = arith.constant 0 : i32
    %c0_i32_0 = arith.constant 0 : i32
    %c0_i32_1 = arith.constant 0 : i32
    return %c0_i32, %c0_i32_0 : i32, i32
  }
  func.func @transform_3(%arg0: i32) -> (i32, i32) {
    %c0_i32 = arith.constant 0 : i32
    %c0_i32_0 = arith.constant 0 : i32
    return %arg0, %c0_i32 : i32, i32
  }
}

</mosaic_0001>

<bundles_post_ra>
// kernel: tpu_custom_call.1
= control target key start
LH: loop header
LB: loop body
LE: loop exit
PB: predicated region body
PF: predicated region fallthrough
CT: control target
= control target key end

     0   :  { %8 = vsyncpa [#allocation3], 0  ;;  %s558_s0 = inlined_call_operand.hbm [shape: bf16[32,32], index: 0, kind: input, shape index: {}]   ;;  %s559_s1 = inlined_call_operand.hbm [shape: bf16[32,32], index: 1, kind: input, shape index: {}]   ;;  %s560_s2 = inlined_call_operand.hbm [shape: bf16[32,32], index: 2, kind: input, shape index: {}]   ;;  %s561_s3 = inlined_call_operand.hbm [shape: f32[32,32], index: 3, kind: output, shape index: {}]  }
   0x1   :  { %9 = vsyncpa [#allocation6], 0 }
   0x2   :  { %10 = vsyncpa [#allocation4], 0  ;;  %s446_s12 = smov [#allocation5]   ;;  %s447_s14 = smov [#allocation2]  }
   0x3   :  { %s28_s13 = sshll.u32 %s446_s12, 4  ;;  %s16_s15 = sshll.u32 %s447_s14, 4  ;;  %s29_s13 = int_to_ptr.vmem [resolvable:$true] %s28_s13  ;;  %s474_s15 = int_to_ptr.vmem [resolvable:$true] %s16_s15 }
   0x4   :  { %s352_s18 = scalar_lea.hbm %s559_s1, 256 }
   0x5   :  { %p353_p0 = scmp.ne.s32.totalorder %s559_s1, %s352_s18  ;;  %p356_p1 = scmp.lt.u32.totalorder %s352_s18, %s559_s1 }
   0x7   :  { %p358_p2 = pnand %p356_p1, %p353_p0 }
   0x9   :  { %361 = shalt.err (!%p358_p2)
}
   0xa   :  { %s362_s23 = scalar_lea.vmem %s29_s13, 256  ;;  %p367_p4 = scmp.lt.s32.totalorder %s29_s13, %s29_s13 }
   0xb   :  { %p363_p3 = scmp.ne.s32.totalorder %s29_s13, %s362_s23  ;;  %p368_p5 = scmp.lt.s32.totalorder %s362_s23, %s362_s23 }
   0xd   :  { %p369_p6 = por %p368_p5, %p367_p4 }
   0xf   :  { %p370_p7 = pnand %p369_p6, %p363_p3 }
  0x11   :  { %373 = shalt.err (!%p370_p7)
}
  0x12   :  { %s448_s24 = smov 64   ;;  %s449_s25 = smov 4  }
  0x13   :  { %34 = dma.hbm_to_vmem [thread:$0]  %s559_s1, 256, %s29_s13, [#allocation6], %s448_s24, %s448_s24, %s449_s25  }
  0x14   :  { %s374_s30 = scalar_lea.hbm %s558_s0, 256 }
  0x15   :  { %p375_p8 = scmp.ne.s32.totalorder %s558_s0, %s374_s30  ;;  %p378_p9 = scmp.lt.u32.totalorder %s374_s30, %s558_s0 }
  0x17   :  { %p380_p10 = pnand %p378_p9, %p375_p8 }
  0x19   :  { %383 = shalt.err (!%p380_p10)
}
  0x1a   :  { %s384_s8 = scalar_lea.vmem %s474_s15, 256  ;;  %p389_p12 = scmp.lt.s32.totalorder %s474_s15, %s474_s15 }
  0x1b   :  { %p385_p11 = scmp.ne.s32.totalorder %s474_s15, %s384_s8  ;;  %p390_p13 = scmp.lt.s32.totalorder %s384_s8, %s384_s8 }
  0x1d   :  { %p391_p0 = por %p390_p13, %p389_p12 }
  0x1f   :  { %p392_p1 = pnand %p391_p0, %p385_p11 }
  0x21   :  { %395 = shalt.err (!%p392_p1)
}
  0x22   :  { %22 = dma.hbm_to_vmem [thread:$0]  %s558_s0, 256, %s474_s15, [#allocation3], %s448_s24, %s448_s24, %s449_s25  }
  0x23   :  { %s450_s10 = smov [#allocation7]   ;;  %s396_s14 = scalar_lea.hbm %s560_s2, 256 }
  0x24   :  { %s40_s11 = sshll.u32 %s450_s10, 4  ;;  %p397_p2 = scmp.ne.s32.totalorder %s560_s2, %s396_s14  ;;  %s41_s11 = int_to_ptr.vmem [resolvable:$true] %s40_s11 }
  0x25   :  { %p400_p3 = scmp.lt.u32.totalorder %s396_s14, %s560_s2 }
  0x27   :  { %p402_p4 = pnand %p400_p3, %p397_p2 }
  0x29   :  { %405 = shalt.err (!%p402_p4)
}
  0x2a   :  { %s406_s20 = scalar_lea.vmem %s41_s11, 256  ;;  %p411_p6 = scmp.lt.s32.totalorder %s41_s11, %s41_s11 }
  0x2b   :  { %p407_p5 = scmp.ne.s32.totalorder %s41_s11, %s406_s20  ;;  %p412_p7 = scmp.lt.s32.totalorder %s406_s20, %s406_s20 }
  0x2d   :  { %p413_p8 = por %p412_p7, %p411_p6 }
  0x2f   :  { %p414_p9 = pnand %p413_p8, %p407_p5 }
  0x31   :  { %417 = shalt.err (!%p414_p9)
}
  0x32   :  { %46 = dma.hbm_to_vmem [thread:$0]  %s560_s2, 256, %s41_s11, [#allocation6], %s448_s24, %s448_s24, %s449_s25  }
  0x33   :  { %440 = dma.done.wait [#allocation3], 256  }
  0x34   :  { %441 = vsyncadd [#allocation3], 4294967040 }
  0x35   :  { %442 = dma.done.wait [#allocation6], 512  }
  0x36   :  { %443 = vsyncadd [#allocation6], 4294966784  ;;  %vm85_vm0 = vcmask 261120   ;;  %v330_v0 = vld [vmem:[#allocation5] sm:$0xff]   ;;  %v331_v1 = vld [vmem:[#allocation5 + $0x8] sm:$0xff]   ;;  %s451_s2 = smov [#allocation8]  }
  0x37   :  { %320 = vmatprep.subr.msk.bf16.mxu0 %vm85_vm0, %v330_v0  ;;  %v93_v2 = vsel %vm85_vm0, %v330_v0, 0  ;;  %v332_v3 = vld [vmem:[#allocation2] sm:$0xff]   ;;  %v96_v4 = vsel %vm85_vm0, %v331_v1, 0  ;;  %v333_v5 = vld [vmem:[#allocation2 + $0x8] sm:$0xff]   ;;  %s273_s21 = sshll.u32 %s451_s2, 4  ;;  %s274_s21 = int_to_ptr.vmem [resolvable:$true] %s273_s21 }
  0x38   :  { %305 = vmatpush3.bf16.xpose.msra.mxu0 %v93_v2  ;;  %308 = vmatprep.mubr.msk.bf16.mxu0 %vm85_vm0, %v332_v3  ;;  %v334_v34 = vld [vmem:[#allocation7] sm:$0xff]   ;;  %v335_v35 = vld [vmem:[#allocation7 + $0x8] sm:$0xff]   ;;  %s418_s22 = scalar_lea.vmem %s274_s21, 512  ;;  %p423_p11 = scmp.lt.s32.totalorder %s274_s21, %s274_s21 }
  0x39   :  { %321 = vmatprep.subr.msk.bf16.mxu0 %vm85_vm0, %v331_v1  ;;  %312 = vmatprep.subr.bf16.mxu1 %v334_v34  ;;  %p419_p10 = scmp.ne.s32.totalorder %s274_s21, %s418_s22  ;;  %p424_p12 = scmp.lt.s32.totalorder %s418_s22, %s418_s22 }
  0x3a   :  { %313 = vmatpush3.bf16.msra.mxu1 %v334_v34 }
  0x3b   :  { %314 = vmatprep.subr.bf16.mxu1 %v335_v35  ;;  %p425_p13 = por %p424_p12, %p423_p11 }
  0x3d   :  { %p426_p0 = pnand %p425_p13, %p419_p10 }
  0x3e   :  { %315 = vmatpush3.bf16.msra.mxu1 %v335_v35 }
  0x40   :  { %307 = vmatpush3.bf16.xpose.msra.mxu0 %v96_v4 }
  0x47   :  { %309 = vmatmul.mubr.msk.bf16.vlgmr.msra.gmra.mrb[0].mxu0 %vm85_vm0, %v333_v5 }
 0x11a   :  { %v310_v6 = vpop.f32.mrb[0].mxu0 }
 0x11b   :  { %v132_v7 = vpop.f32.mrb[1].mxu0  ;;  %v153_v8 = vsel %vm85_vm0, %v310_v6, -inf }
 0x11c   :  { %154 = vmax.xlane.f32.xlu1 %v153_v8  ;;  %v311_v9 = vpop.f32.mrb[2].mxu0  ;;  %v147_v10 = vsel %vm85_vm0, %v132_v7, -inf }
 0x11d   :  { %148 = vmax.xlane.f32.xlu0 %v147_v10  ;;  %v135_v11 = vpop.f32.mrb[3].mxu0  ;;  %v156_v12 = vsel %vm85_vm0, %v311_v9, -inf }
 0x11e   :  { %v150_v13 = vsel %vm85_vm0, %v135_v11, -inf }
 0x120   :  { %157 = vmax.xlane.f32.xlu1 %v156_v12 }
 0x121   :  { %151 = vmax.xlane.f32.xlu0 %v150_v13 }
 0x1a9   :  { %v155_v14 = vpop.xlane.xlu1 %154 }
 0x1aa   :  { %v161_v15 = vsub.f32 %v310_v6, %v155_v14  ;;  %v149_v16 = vpop.xlane.xlu0 %148 }
 0x1ab   :  { %v159_v17 = vsub.f32 %v132_v7, %v149_v16 }
 0x1ac   :  { %v167_v18 = vmul.f32 1.442695, %v161_v15 }
 0x1ad   :  { %v163_v19 = vmul.f32 1.442695, %v159_v17  ;;  %v158_v20 = vpop.xlane.xlu1 %157 }
 0x1ae   :  { %v162_v21 = vsub.f32 %v311_v9, %v158_v20  ;;  %v152_v22 = vpop.xlane.xlu0 %151 }
 0x1af   :  { %336 = vpow2.f32 %v163_v19  ;;  %v160_v23 = vsub.f32 %v135_v11, %v152_v22 }
 0x1b0   :  { %338 = vpow2.f32 %v167_v18  ;;  %v169_v24 = vmul.f32 1.442695, %v162_v21 }
 0x1b1   :  { %v165_v25 = vmul.f32 1.442695, %v160_v23 }
 0x1b3   :  { %340 = vpow2.f32 %v165_v25 }
 0x1b4   :  { %342 = vpow2.f32 %v169_v24 }
 0x1b9   :  { %v337_v26 = vpop.eup %336 }
 0x1ba   :  { %v171_v27 = vsel %vm85_vm0, %v337_v26, 0.0  ;;  %v339_v28 = vpop.eup %338 }
 0x1bb   :  { %172 = vadd.xlane.f32.xlu0 %v171_v27  ;;  %v177_v30 = vsel %vm85_vm0, %v339_v28, 0.0 }
 0x1bd   :  { %v341_v29 = vpop.eup %340 }
 0x1be   :  { %v174_v31 = vsel %vm85_vm0, %v341_v29, 0.0  ;;  %v343_v32 = vpop.eup %342 }
 0x1bf   :  { %178 = vadd.xlane.f32.xlu0 %v177_v30  ;;  %175 = vadd.xlane.f32.xlu1 %v174_v31  ;;  %v180_v33 = vsel %vm85_vm0, %v343_v32, 0.0 }
 0x1c3   :  { %181 = vadd.xlane.f32.xlu1 %v180_v33 }
 0x248   :  { %v173_v36 = vpop.xlane.xlu0 %172 }
 0x249   :  { %344 = vrcp.f32 %v173_v36 }
 0x24c   :  { %v176_v37 = vpop.xlane.xlu1 %175  ;;  %v179_v38 = vpop.xlane.xlu0 %178 }
 0x24d   :  { %346 = vrcp.f32 %v176_v37 }
 0x24e   :  { %348 = vrcp.f32 %v179_v38 }
 0x250   :  { %v182_v39 = vpop.xlane.xlu1 %181 }
 0x251   :  { %350 = vrcp.f32 %v182_v39 }
 0x253   :  { %v345_v40 = vpop.eup %344 }
 0x254   :  { %v187_v42 = vmul.f32 %v345_v40, %v337_v26 }
 0x257   :  { %v347_v41 = vpop.eup %346 }
 0x258   :  { %v188_v43 = vmul.f32 %v347_v41, %v341_v29  ;;  %v349_v44 = vpop.eup %348 }
 0x259   :  { %v189_v47 = vmul.f32 %v349_v44, %v339_v28 }
 0x25a   :  { %v191_v45 = vpack.c.bf16 %v188_v43, %v187_v42 }
 0x25b   :  { %v351_v46 = vpop.eup %350 }
 0x25c   :  { %316 = vmatprep.mubr.msk.bf16.mxu1 %vm85_vm0, %v191_v45  ;;  %v190_v48 = vmul.f32 %v351_v46, %v343_v32 }
 0x25e   :  { %v192_v49 = vpack.c.bf16 %v190_v48, %v189_v47 }
 0x260   :  { %317 = vmatmul.mubr.msk.bf16.vlgmr.msra.gmra.mrb[0].mxu1 %vm85_vm0, %v192_v49 }
 0x333   :  { %v318_v50 = vpop.f32.mrb[0].mxu1 }
 0x334   :  { %266 = vst.msk [vmem:[#allocation8 + $0x10] sm:$0xff] %vm85_vm0, %v318_v50  ;;  %v249_v51 = vpop.f32.mrb[1].mxu1 }
 0x335   :  { %264 = vst.msk [vmem:[#allocation8] sm:$0xff] %vm85_vm0, %v249_v51  ;;  %v319_v52 = vpop.f32.mrb[2].mxu1 }
 0x336   :  { %267 = vst.msk [vmem:[#allocation8 + $0x18] sm:$0xff] %vm85_vm0, %v319_v52  ;;  %v252_v53 = vpop.f32.mrb[3].mxu1 }
 0x337   :  { %265 = vst.msk [vmem:[#allocation8 + $0x8] sm:$0xff] %vm85_vm0, %v252_v53 }
 0x338   :  { %429 = shalt.err (!%p426_p0)
}
 0x339   :  { %s430_s25 = scalar_lea.hbm %s561_s3, 512 }
 0x33a   :  { %p431_p1 = scmp.ne.s32.totalorder %s561_s3, %s430_s25  ;;  %p434_p2 = scmp.lt.u32.totalorder %s430_s25, %s561_s3 }
 0x33c   :  { %p436_p3 = pnand %p434_p2, %p431_p1 }
 0x33e   :  { %439 = shalt.err (!%p436_p3)
}
 0x33f   :  { %s452_s30 = smov 128   ;;  %s453_s4 = smov 8  }
 0x340   :  { %279 = dma.vmem_to_hbm [thread:$0]  %s274_s21, 512, %s561_s3, [#allocation4], %s452_s30, %s452_s30, %s453_s4  }
 0x341   :  { %444 = dma.done.wait [#allocation4], 512  }
 0x342   :  { %445 = vsyncadd [#allocation4], 4294966784 }
 0x343   :  { %283 = vsyncpa [#allocation3], 1 }
 0x344   :  { %284 = vsyncpa [#allocation6], 1 }
 0x345   :  { %285 = vsyncpa [#allocation4], 1 }

</bundles_post_ra>
